<compile_context>
chip_gen: v7x
topology: tpu7x:2x2x1
jax: 0.10.0
libtpu: 0.0.40
codegen_flags: <defaults>
</compile_context>

<pallas_src>
import jax
import jax.numpy as jnp
from jax.experimental import pallas as pl
from jax.experimental.pallas import tpu as pltpu

LANES = 128        # vreg lane width
BLOCK_ROWS = 4096  # 4096*128*4B = 2 MiB per f32 input block per buffer


def _make_kernel(block_rows, needs_mask, valid_in_last):
    """Builds the per-tile kernel; all three params are static Python values."""

    def kernel(x_ref, t_ref, o_ref):
        x = x_ref[...].astype(jnp.float32)
        t = t_ref[...].astype(jnp.float32)

        # Shared exp for the numerically-stable BCE-with-logits term AND sigmoid:
        #   bce        = max(x,0) - x*t + log1p(exp(-|x|))        (PyTorch form)
        #   sigmoid(x) = 1/(1+e) if x>=0 else e/(1+e),  with e = exp(-|x|)
        e = jnp.exp(-jnp.abs(x))
        one_p_e = 1.0 + e
        # EUP approx reciprocal + one Newton step (error ~2^-24) keeps the
        # divide off the VALU slot (v7x is VALU-bound for this kernel).
        inv = pl.reciprocal(one_p_e, approx=True)
        inv = inv * (2.0 - one_p_e * inv)
        bce = jnp.maximum(x, 0.0) - x * t + jnp.log1p(e)
        sig = jnp.where(x >= 0.0, inv, e * inv)
        inter = sig * t

        def store(b, it, s, tt):
            # Per-lane partial sums only (sublane-direction reduce); cross-lane
            # and cross-block reduction is finished outside the kernel.
            o_ref[0, 0:1, :] = jnp.sum(b, axis=0, keepdims=True)
            o_ref[0, 1:2, :] = jnp.sum(it, axis=0, keepdims=True)
            o_ref[0, 2:3, :] = jnp.sum(s, axis=0, keepdims=True)
            o_ref[0, 3:4, :] = jnp.sum(tt, axis=0, keepdims=True)

        if not needs_mask:
            store(bce, inter, sig, t)
        else:
            i = pl.program_id(0)
            last = pl.num_programs(0) - 1

            @pl.when(i != last)
            def _():
                store(bce, inter, sig, t)

            @pl.when(i == last)
            def _():
                # Block-LOCAL indices only: < block_rows*128 <= 2^20, so no
                # int32 overflow even for multi-billion-element tensors.
                # Select (not multiply) so garbage in out-of-bounds rows of a
                # ragged last block can never propagate NaN/Inf into the sums.
                row_id = jax.lax.broadcasted_iota(jnp.int32, x.shape, 0)
                lane_id = jax.lax.broadcasted_iota(jnp.int32, x.shape, 1)
                valid = row_id * LANES + lane_id < valid_in_last
                zero = jnp.zeros_like(x)
                store(jnp.where(valid, bce, zero),
                      jnp.where(valid, inter, zero),
                      jnp.where(valid, sig, zero),
                      jnp.where(valid, t, zero))

    return kernel


def bce_log_dice_loss(logits, target, *, block_rows=BLOCK_ROWS):
    """Pallas implementation of BCELogDiceLoss.forward(input, target)."""
    assert logits.shape == target.shape
    n = int(logits.size)

    # Keep HBM dtype as given (bf16 stays bf16 -> half the HBM traffic);
    # the kernel upcasts to f32 internally.
    xf = logits.reshape(-1)
    tf = target.reshape(-1)

    # Pad to a 128-lane multiple only when strictly necessary (no-op for
    # typical NCHW shapes).  The ragged tail is masked in the LAST block only.
    # TODO(synk): for ragged shapes this <=127-element pad still materializes a
    # full XLA copy; a 128-aligned-prefix + plain-JAX-tail split would avoid it.
    pad = (-n) % LANES
    if pad:
        xf = jnp.pad(xf, (0, pad))
        tf = jnp.pad(tf, (0, pad))
    rows = (n + pad) // LANES

    # Block rows: big tile (multiple of 8) or the full row extent for small inputs.
    br = block_rows if rows >= block_rows else rows
    grid_len = int(pl.cdiv(rows, br))
    needs_mask = (grid_len * br * LANES) != n          # static
    valid_in_last = n - (grid_len - 1) * br * LANES    # static, <= br*128

    x2 = xf.reshape(rows, LANES)
    t2 = tf.reshape(rows, LANES)

    kernel = _make_kernel(br, needs_mask, valid_in_last)

    # VMEM budget: 2 streams x 2 pipeline buffers x input block, plus headroom
    # for full-tile f32 elementwise temporaries; capped under v7x's 64 MiB
    # physical VMEM (safe on v5e/v6e's 128 MiB as well).
    in_block = br * LANES * x2.dtype.itemsize
    tile_f32 = br * LANES * 4
    vmem_limit = int(max(16 << 20,
                         min(48 << 20, 4 * in_block + 14 * tile_f32 + (2 << 20))))

    out_bytes = grid_len * 4 * LANES * 4
    cost = pl.CostEstimate(
        flops=14 * n,
        transcendentals=3 * n,
        bytes_accessed=int(x2.size * x2.dtype.itemsize
                           + t2.size * t2.dtype.itemsize
                           + out_bytes),
    )

    partials = pl.pallas_call(
        kernel,
        out_shape=jax.ShapeDtypeStruct((grid_len, 4, LANES), jnp.float32),
        grid=(grid_len,),
        in_specs=[
            pl.BlockSpec((br, LANES), lambda i: (i, 0)),
            pl.BlockSpec((br, LANES), lambda i: (i, 0)),
        ],
        out_specs=pl.BlockSpec((1, 4, LANES), lambda i: (i, 0, 0)),
        compiler_params=pltpu.CompilerParams(
            # No grid-carried state -> grid axis can shard across TensorCores
            # (dual-TC on v7x); harmless on single-TC v5e/v6e.
            dimension_semantics=("parallel",),
            vmem_limit_bytes=vmem_limit),
        cost_estimate=cost,
    )(x2, t2)

    # Tiny finish in plain JAX: sum over blocks and lanes.
    sums = jnp.sum(partials, axis=(0, 2))              # (4,)
    bce_sum, inter, sig_sum, t_sum = sums[0], sums[1], sums[2], sums[3]

    smooth = jnp.float32(1.0)
    bce_mean = bce_sum / jnp.float32(n)                          # BCEWithLogitsLoss(mean)
    dice = (2.0 * inter + smooth) / (sig_sum + t_sum + smooth)   # dice_loss
    return bce_mean - jnp.log(dice)


def _reference_loss(x, t):
    """Pure-JAX reference matching the PyTorch module."""
    x = x.astype(jnp.float32)
    t = t.astype(jnp.float32)
    bce = jnp.mean(jnp.maximum(x, 0.0) - x * t + jnp.log1p(jnp.exp(-jnp.abs(x))))
    s = jax.nn.sigmoid(x)
    dice = (2.0 * jnp.sum(s * t) + 1.0) / (jnp.sum(s) + jnp.sum(t) + 1.0)
    return bce - jnp.log(dice)


if __name__ == "__main__":
    key = jax.random.PRNGKey(0)
    k1, k2, k3, k4 = jax.random.split(key, 4)

    # NCHW logits + binary target, like a segmentation head output.
    x = jax.random.normal(k1, (2, 4, 16, 16), dtype=jnp.float32)
    target = jax.random.bernoulli(k2, p=0.3, shape=(2, 4, 16, 16)).astype(jnp.float32)

    loss = jax.block_until_ready(bce_log_dice_loss(x, target))
    ref = jax.block_until_ready(_reference_loss(x, target))
    assert jnp.allclose(loss, ref, rtol=1e-5, atol=1e-5), (loss, ref)

    # Ragged shape exercises the last-block tail-mask path.
    xr = jax.random.normal(k3, (3, 5, 7, 9), dtype=jnp.float32)
    tr = jax.random.bernoulli(k4, p=0.4, shape=(3, 5, 7, 9)).astype(jnp.float32)
    loss_r = jax.block_until_ready(bce_log_dice_loss(xr, tr))
    ref_r = jax.block_until_ready(_reference_loss(xr, tr))
    assert jnp.allclose(loss_r, ref_r, rtol=1e-5, atol=1e-5), (loss_r, ref_r)

    print("KERNEL_OK")
</pallas_src>

<mosaic_0001>
module attributes {stable_mosaic.version = 11 : i64} {
  func.func @kernel(%arg0: i32, %arg1: memref<16x128xf32, #tpu.memory_space<vmem>>, %arg2: memref<16x128xf32, #tpu.memory_space<vmem>>, %arg3: memref<1x4x128xf32, #tpu.memory_space<vmem>>) attributes {dimension_semantics = [#tpu.dimension_semantics<parallel>], iteration_bounds = array<i64: 1>, scalar_prefetch = 0 : i64, scratch_operands = 0 : i64, tpu.core_type = #tpu.core_type<tc>, window_params = [{transform_indices = @transform_0, window_bounds = array<i64: 16, 128>}, {transform_indices = @transform_1, window_bounds = array<i64: 16, 128>}, {transform_indices = @transform_2, window_bounds = array<i64: 1, 4, 128>}]} {
    %c0 = arith.constant 0 : index
    %c0_0 = arith.constant 0 : index
    %0 = vector.load %arg1[%c0, %c0_0] : memref<16x128xf32, #tpu.memory_space<vmem>>, vector<16x128xf32>
    %c0_1 = arith.constant 0 : index
    %c0_2 = arith.constant 0 : index
    %1 = vector.load %arg2[%c0_1, %c0_2] : memref<16x128xf32, #tpu.memory_space<vmem>>, vector<16x128xf32>
    %2 = math.absf %0 : vector<16x128xf32>
    %cst = arith.constant 0.000000e+00 : f32
    %3 = vector.broadcast %cst : f32 to vector<16x128xf32>
    %4 = arith.subf %3, %2 : vector<16x128xf32>
    %5 = math.exp %4 : vector<16x128xf32>
    %cst_3 = arith.constant 1.000000e+00 : f32
    %6 = vector.broadcast %cst_3 : f32 to vector<16x128xf32>
    %7 = arith.addf %6, %5 : vector<16x128xf32>
    %8 = tpu.reciprocal %7 {approx = true} : vector<16x128xf32> -> vector<16x128xf32>
    %9 = arith.mulf %7, %8 : vector<16x128xf32>
    %cst_4 = arith.constant 2.000000e+00 : f32
    %10 = vector.broadcast %cst_4 : f32 to vector<16x128xf32>
    %11 = arith.subf %10, %9 : vector<16x128xf32>
    %12 = arith.mulf %8, %11 : vector<16x128xf32>
    %cst_5 = arith.constant 0.000000e+00 : f32
    %13 = vector.broadcast %cst_5 : f32 to vector<16x128xf32>
    %14 = arith.maximumf %0, %13 : vector<16x128xf32>
    %15 = arith.mulf %0, %1 : vector<16x128xf32>
    %16 = arith.subf %14, %15 : vector<16x128xf32>
    %17 = math.log1p %5 : vector<16x128xf32>
    %18 = arith.addf %16, %17 : vector<16x128xf32>
    %cst_6 = arith.constant 0.000000e+00 : f32
    %19 = vector.broadcast %cst_6 : f32 to vector<16x128xf32>
    %20 = arith.cmpf oge, %0, %19 : vector<16x128xf32>
    %21 = arith.mulf %5, %12 : vector<16x128xf32>
    %22 = arith.select %20, %12, %21 : vector<16x128xi1>, vector<16x128xf32>
    %23 = arith.mulf %22, %1 : vector<16x128xf32>
    %cst_7 = arith.constant dense<0.000000e+00> : vector<128xf32>
    %24 = vector.multi_reduction <add>, %18, %cst_7 [0] : vector<16x128xf32> to vector<128xf32>
    %25 = vector.shape_cast %24 : vector<128xf32> to vector<1x128xf32>
    %c0_8 = arith.constant 0 : index
    %c0_9 = arith.constant 0 : index
    %c0_10 = arith.constant 0 : index
    %26 = vector.load %arg3[%c0_8, %c0_9, %c0_10] : memref<1x4x128xf32, #tpu.memory_space<vmem>>, vector<1x1x128xf32>
    %27 = vector.shape_cast %26 : vector<1x1x128xf32> to vector<1x128xf32>
    %28 = vector.shape_cast %25 : vector<1x128xf32> to vector<1x1x128xf32>
    tpu.vector_store %arg3[%c0_8, %c0_9, %c0_10], %28 {strides = array<i32>} : memref<1x4x128xf32, #tpu.memory_space<vmem>>, vector<1x1x128xf32>,
    %cst_11 = arith.constant dense<0.000000e+00> : vector<128xf32>
    %29 = vector.multi_reduction <add>, %23, %cst_11 [0] : vector<16x128xf32> to vector<128xf32>
    %30 = vector.shape_cast %29 : vector<128xf32> to vector<1x128xf32>
    %c0_12 = arith.constant 0 : index
    %c1 = arith.constant 1 : index
    %c0_13 = arith.constant 0 : index
    %31 = vector.load %arg3[%c0_12, %c1, %c0_13] : memref<1x4x128xf32, #tpu.memory_space<vmem>>, vector<1x1x128xf32>
    %32 = vector.shape_cast %31 : vector<1x1x128xf32> to vector<1x128xf32>
    %33 = vector.shape_cast %30 : vector<1x128xf32> to vector<1x1x128xf32>
    tpu.vector_store %arg3[%c0_12, %c1, %c0_13], %33 {strides = array<i32>} : memref<1x4x128xf32, #tpu.memory_space<vmem>>, vector<1x1x128xf32>,
    %cst_14 = arith.constant dense<0.000000e+00> : vector<128xf32>
    %34 = vector.multi_reduction <add>, %22, %cst_14 [0] : vector<16x128xf32> to vector<128xf32>
    %35 = vector.shape_cast %34 : vector<128xf32> to vector<1x128xf32>
    %c0_15 = arith.constant 0 : index
    %c2 = arith.constant 2 : index
    %c0_16 = arith.constant 0 : index
    %36 = vector.load %arg3[%c0_15, %c2, %c0_16] : memref<1x4x128xf32, #tpu.memory_space<vmem>>, vector<1x1x128xf32>
    %37 = vector.shape_cast %36 : vector<1x1x128xf32> to vector<1x128xf32>
    %38 = vector.shape_cast %35 : vector<1x128xf32> to vector<1x1x128xf32>
    tpu.vector_store %arg3[%c0_15, %c2, %c0_16], %38 {strides = array<i32>} : memref<1x4x128xf32, #tpu.memory_space<vmem>>, vector<1x1x128xf32>,
    %cst_17 = arith.constant dense<0.000000e+00> : vector<128xf32>
    %39 = vector.multi_reduction <add>, %1, %cst_17 [0] : vector<16x128xf32> to vector<128xf32>
    %40 = vector.shape_cast %39 : vector<128xf32> to vector<1x128xf32>
    %c0_18 = arith.constant 0 : index
    %c3 = arith.constant 3 : index
    %c0_19 = arith.constant 0 : index
    %41 = vector.load %arg3[%c0_18, %c3, %c0_19] : memref<1x4x128xf32, #tpu.memory_space<vmem>>, vector<1x1x128xf32>
    %42 = vector.shape_cast %41 : vector<1x1x128xf32> to vector<1x128xf32>
    %43 = vector.shape_cast %40 : vector<1x128xf32> to vector<1x1x128xf32>
    tpu.vector_store %arg3[%c0_18, %c3, %c0_19], %43 {strides = array<i32>} : memref<1x4x128xf32, #tpu.memory_space<vmem>>, vector<1x1x128xf32>,
    return
  }
  func.func @transform_0(%arg0: i32) -> (i32, i32) {
    %c0_i32 = arith.constant 0 : i32
    %c0_i32_0 = arith.constant 0 : i32
    return %arg0, %c0_i32 : i32, i32
  }
  func.func @transform_1(%arg0: i32) -> (i32, i32) {
    %c0_i32 = arith.constant 0 : i32
    %c0_i32_0 = arith.constant 0 : i32
    return %arg0, %c0_i32 : i32, i32
  }
  func.func @transform_2(%arg0: i32) -> (i32, i32, i32) {
    %c0_i32 = arith.constant 0 : i32
    %c0_i32_0 = arith.constant 0 : i32
    %c0_i32_1 = arith.constant 0 : i32
    return %arg0, %c0_i32, %c0_i32_0 : i32, i32, i32
  }
}

</mosaic_0001>

<bundles_post_ra>
// kernel: tpu_custom_call.1
= control target key start
LH: loop header
LB: loop body
LE: loop exit
PB: predicated region body
PF: predicated region fallthrough
CT: control target
= control target key end

     0   :  { %7 = vsyncpa [#allocation3], 0  ;;  %s311_s0 = inlined_call_operand.hbm [shape: f32[16,128], index: 0, kind: input, shape index: {}]   ;;  %s312_s1 = inlined_call_operand.hbm [shape: f32[16,128], index: 1, kind: input, shape index: {}]   ;;  %s313_s2 = inlined_call_operand.hbm [shape: f32[1,4,128], index: 2, kind: output, shape index: {}]  }
   0x1   :  { %8 = vsyncpa [#allocation6], 0 }
   0x2   :  { %9 = vsyncpa [#allocation4], 0  ;;  %s233_s9 = smov [#allocation2]   ;;  %s161_s13 = scalar_lea.hbm %s311_s0, 256 }
   0x3   :  { %s15_s10 = sshll.u32 %s233_s9, 4  ;;  %p162_p0 = scmp.ne.s32.totalorder %s311_s0, %s161_s13  ;;  %s16_s10 = int_to_ptr.vmem [resolvable:$true] %s15_s10 }
   0x4   :  { %p165_p1 = scmp.lt.u32.totalorder %s161_s13, %s311_s0 }
   0x6   :  { %p167_p2 = pnand %p165_p1, %p162_p0 }
   0x8   :  { %170 = shalt.err (!%p167_p2)
}
   0x9   :  { %s171_s18 = scalar_lea.vmem %s16_s10, 256  ;;  %p176_p4 = scmp.lt.s32.totalorder %s16_s10, %s16_s10 }
   0xa   :  { %p172_p3 = scmp.ne.s32.totalorder %s16_s10, %s171_s18  ;;  %p177_p5 = scmp.lt.s32.totalorder %s171_s18, %s171_s18 }
   0xc   :  { %p178_p6 = por %p177_p5, %p176_p4 }
   0xe   :  { %p179_p7 = pnand %p178_p6, %p172_p3 }
  0x10   :  { %182 = shalt.err (!%p179_p7)
}
  0x11   :  { %s234_s19 = smov 128   ;;  %s235_s20 = smov 8  }
  0x12   :  { %21 = dma.hbm_to_vmem [thread:$0]  %s311_s0, 256, %s16_s10, [#allocation3], %s234_s19, %s234_s19, %s235_s20  }
  0x13   :  { %s236_s23 = smov [#allocation5]   ;;  %s183_s27 = scalar_lea.hbm %s312_s1, 256 }
  0x14   :  { %s27_s24 = sshll.u32 %s236_s23, 4  ;;  %p184_p8 = scmp.ne.s32.totalorder %s312_s1, %s183_s27  ;;  %s28_s24 = int_to_ptr.vmem [resolvable:$true] %s27_s24 }
  0x15   :  { %p187_p9 = scmp.lt.u32.totalorder %s183_s27, %s312_s1 }
  0x17   :  { %p189_p10 = pnand %p187_p9, %p184_p8 }
  0x19   :  { %192 = shalt.err (!%p189_p10)
}
  0x1a   :  { %s193_s4 = scalar_lea.vmem %s28_s24, 256  ;;  %p198_p12 = scmp.lt.s32.totalorder %s28_s24, %s28_s24 }
  0x1b   :  { %p194_p11 = scmp.ne.s32.totalorder %s28_s24, %s193_s4  ;;  %p199_p13 = scmp.lt.s32.totalorder %s193_s4, %s193_s4 }
  0x1d   :  { %p200_p0 = por %p199_p13, %p198_p12 }
  0x1f   :  { %p201_p1 = pnand %p200_p0, %p194_p11 }
  0x21   :  { %204 = shalt.err (!%p201_p1)
}
  0x22   :  { %33 = dma.hbm_to_vmem [thread:$0]  %s312_s1, 256, %s28_s24, [#allocation6], %s234_s19, %s234_s19, %s235_s20  }
  0x23   :  { %227 = dma.done.wait [#allocation3], 256  }
  0x24   :  { %228 = vsyncadd [#allocation3], 4294967040 }
  0x25   :  { %229 = dma.done.wait [#allocation6], 256  }
  0x26   :  { %230 = vsyncadd [#allocation6], 4294967040  ;;  %v277_v0 = vld [vmem:[#allocation2] sm:$0xff]  ;;  %v279_v1 = vld [vmem:[#allocation2 + $0x8] sm:$0xff]  ;;  %s237_s1 = smov [#allocation7]  }
  0x27   :  { %v44_v2 = vand.u32 2147483647, %v277_v0  ;;  %v45_v3 = vand.u32 2147483647, %v279_v1  ;;  %v283_v4 = vld [vmem:[#allocation5] sm:$0xff]  ;;  %v285_v5 = vld [vmem:[#allocation5 + $0x8] sm:$0xff] }
  0x28   :  { %v120_v8 = vadd.f32 %v285_v5, %v283_v4  ;;  %v62_v24 = vmax.f32 %v277_v0, 0.0  ;;  %v64_v25 = vmul.f32 %v283_v4, %v277_v0  ;;  %v63_v28 = vmax.f32 %v279_v1, 0.0  ;;  %s134_s6 = sshll.u32 %s237_s1, 4  ;;  %s135_s6 = int_to_ptr.vmem [resolvable:$true] %s134_s6 }
  0x29   :  { %v46_v6 = vsub.f32 0.0, %v44_v2  ;;  %v47_v7 = vsub.f32 0.0, %v45_v3  ;;  %v65_v29 = vmul.f32 %v285_v5, %v279_v1  ;;  %vm88_vm2 = vcmp.ge.f32.partialorder %v277_v0, 0.0  ;;  %s205_s7 = scalar_lea.vmem %s135_s6, 64  ;;  %p210_p3 = scmp.lt.s32.totalorder %s135_s6, %s135_s6 }
  0x2a   :  { %v121_v11 = vrot.slane %v120_v8, 4  ;;  %v66_v33 = vsub.f32 %v62_v24, %v64_v25  ;;  %vm89_vm3 = vcmp.ge.f32.partialorder %v279_v1, 0.0  ;;  %p206_p2 = scmp.ne.s32.totalorder %s135_s6, %s205_s7  ;;  %p211_p4 = scmp.lt.s32.totalorder %s205_s7, %s205_s7 }
  0x2b   :  { %v48_v9 = vmul.f32 1.442695, %v46_v6  ;;  %v50_v10 = vmul.f32 1.442695, %v47_v7  ;;  %v67_v36 = vsub.f32 %v63_v28, %v65_v29 }
  0x2c   :  { %v122_v12 = vadd.f32 %v121_v11, %v120_v8  ;;  %p212_p5 = por %p211_p4, %p210_p3 }
  0x2d   :  { %149 = vpow2.f32 %v48_v9 }
  0x2e   :  { %151 = vpow2.f32 %v50_v10  ;;  %v123_v13 = vrot.slane %v122_v12, 2  ;;  %p213_p6 = pnand %p212_p5, %p206_p2 }
  0x30   :  { %v124_v14 = vadd.f32 %v123_v13, %v122_v12 }
  0x32   :  { %v125_v15 = vrot.slane %v124_v14, 1 }
  0x34   :  { %v126_v16 = vadd.f32 %v125_v15, %v124_v14 }
  0x36   :  { %127 = vst [vmem:[#allocation7 + $0x3] sm:$0x1] %v126_v16 }
  0x37   :  { %v150_v17 = vpop.eup %149 }
  0x38   :  { %v152_v18 = vpop.eup %151  ;;  %v52_v19 = vadd.f32 1.0, %v150_v17  ;;  %v71_v21 = vmul.f32 -0.5, %v150_v17  ;;  %v74_v26 = vand.u32 2147483647, %v150_v17 }
  0x39   :  { %v53_v20 = vadd.f32 1.0, %v152_v18  ;;  %v80_v22 = vmul.f32 -0.5, %v152_v18  ;;  %v83_v30 = vand.u32 2147483647, %v152_v18 }
  0x3a   :  { %153 = vlog2.f32 %v52_v19  ;;  %v72_v23 = vadd.f32 1.0, %v71_v21  ;;  %vm75_vm0 = vcmp.lt.f32.partialorder %v74_v26, 0.0004427343 }
  0x3b   :  { %155 = vlog2.f32 %v53_v20  ;;  %v81_v27 = vadd.f32 1.0, %v80_v22  ;;  %vm84_vm1 = vcmp.lt.f32.partialorder %v83_v30, 0.0004427343 }
  0x3c   :  { %157 = vrcp.f32 %v52_v19  ;;  %v73_v31 = vmul.f32 %v150_v17, %v72_v23 }
  0x3d   :  { %159 = vrcp.f32 %v53_v20  ;;  %v82_v34 = vmul.f32 %v152_v18, %v81_v27 }
  0x44   :  { %v154_v32 = vpop.eup %153 }
  0x45   :  { %v156_v35 = vpop.eup %155  ;;  %v70_v37 = vmul.f32 0.6931472, %v154_v32 }
  0x46   :  { %v158_v38 = vpop.eup %157  ;;  %v79_v39 = vmul.f32 0.6931472, %v156_v35 }
  0x47   :  { %v160_v40 = vpop.eup %159  ;;  %v76_v41 = vsel %vm75_vm0, %v73_v31, %v70_v37  ;;  %v56_v42 = vmul.f32 %v158_v38, %v52_v19 }
  0x48   :  { %v85_v43 = vsel %vm84_vm1, %v82_v34, %v79_v39  ;;  %v86_v44 = vadd.f32 %v76_v41, %v66_v33  ;;  %v57_v45 = vmul.f32 %v160_v40, %v53_v20 }
  0x49   :  { %v87_v46 = vadd.f32 %v85_v43, %v67_v36  ;;  %v58_v47 = vsub.f32 2.0, %v56_v42 }
  0x4a   :  { %v59_v48 = vsub.f32 2.0, %v57_v45 }
  0x4b   :  { %v96_v49 = vadd.f32 %v87_v46, %v86_v44  ;;  %v60_v50 = vmul.f32 %v158_v38, %v58_v47 }
  0x4c   :  { %v61_v51 = vmul.f32 %v160_v40, %v59_v48 }
  0x4d   :  { %v97_v52 = vrot.slane %v96_v49, 4  ;;  %v90_v53 = vmul.f32 %v150_v17, %v60_v50 }
  0x4e   :  { %v91_v54 = vmul.f32 %v152_v18, %v61_v51 }
  0x4f   :  { %v98_v55 = vadd.f32 %v97_v52, %v96_v49  ;;  %v92_v56 = vsel %vm88_vm2, %v60_v50, %v90_v53 }
  0x50   :  { %v93_v57 = vsel %vm89_vm3, %v61_v51, %v91_v54  ;;  %v94_v58 = vmul.f32 %v92_v56, %v283_v4 }
  0x51   :  { %v99_v59 = vrot.slane %v98_v55, 2  ;;  %v95_v60 = vmul.f32 %v93_v57, %v285_v5  ;;  %v112_v61 = vadd.f32 %v93_v57, %v92_v56 }
  0x53   :  { %v100_v62 = vadd.f32 %v99_v59, %v98_v55  ;;  %v104_v63 = vadd.f32 %v95_v60, %v94_v58  ;;  %v113_v2 = vrot.slane %v112_v61, 4 }
  0x55   :  { %v101_v3 = vrot.slane %v100_v62, 1  ;;  %v105_v6 = vrot.slane %v104_v63, 4  ;;  %v114_v0 = vadd.f32 %v113_v2, %v112_v61 }
  0x57   :  { %v102_v7 = vadd.f32 %v101_v3, %v100_v62  ;;  %v106_v8 = vadd.f32 %v105_v6, %v104_v63  ;;  %v115_v1 = vrot.slane %v114_v0, 2 }
  0x59   :  { %103 = vst [vmem:[#allocation7] sm:$0x1] %v102_v7  ;;  %v107_v9 = vrot.slane %v106_v8, 2  ;;  %v116_v10 = vadd.f32 %v115_v1, %v114_v0 }
  0x5b   :  { %v108_v11 = vadd.f32 %v107_v9, %v106_v8  ;;  %v117_v12 = vrot.slane %v116_v10, 1 }
  0x5d   :  { %v109_v4 = vrot.slane %v108_v11, 1  ;;  %v118_v13 = vadd.f32 %v117_v12, %v116_v10 }
  0x5f   :  { %v110_v5 = vadd.f32 %v109_v4, %v108_v11  ;;  %119 = vst [vmem:[#allocation7 + $0x2] sm:$0x1] %v118_v13 }
  0x61   :  { %111 = vst [vmem:[#allocation7 + $0x1] sm:$0x1] %v110_v5 }
  0x62   :  { %216 = shalt.err (!%p213_p6)
}
  0x63   :  { %s217_s10 = scalar_lea.hbm %s313_s2, 64 }
  0x64   :  { %p218_p7 = scmp.ne.s32.totalorder %s313_s2, %s217_s10  ;;  %p221_p8 = scmp.lt.u32.totalorder %s217_s10, %s313_s2 }
  0x66   :  { %p223_p9 = pnand %p221_p8, %p218_p7 }
  0x68   :  { %226 = shalt.err (!%p223_p9)
}
  0x69   :  { %137 = dma.vmem_to_hbm [thread:$0]  %s135_s6, 64, %s313_s2, [#allocation4]  }
  0x6a   :  { %231 = dma.done.wait [#allocation4], 64  }
  0x6b   :  { %232 = vsyncadd [#allocation4], 4294967232 }
  0x6c   :  { %141 = vsyncpa [#allocation3], 1 }
  0x6d   :  { %142 = vsyncpa [#allocation6], 1 }
  0x6e   :  { %143 = vsyncpa [#allocation4], 1 }

</bundles_post_ra>
